<compile_context>
chip_gen: v7x
topology: tpu7x:2x2x1
jax: 0.10.0
libtpu: 0.0.40
codegen_flags: <defaults>
</compile_context>

<pallas_src>
import functools

import jax
import jax.numpy as jnp
from jax import lax
from jax.experimental import pallas as pl
from jax.experimental.pallas import tpu as pltpu

KH = KW = 3  # 3x3 conv taps


def _ocr_conv_kernel(x_ref, w_ref, b_ref, o_ref, p_ref, *, wp):
    """relu( conv3x3_SAME(u8_image, W/255) + b ) for ONE row band, im2col fused.

    x_ref: (1, 1, C, Lin)      bf16  flattened padded band (row stride wp) + halo
    w_ref: (COUT, KH*KW*C)     bf16  channels-first conv weights, pre-scaled 1/255
    b_ref: (COUT, 1)           f32
    o_ref: (1, 1, COUT, Lout)  out dtype; Lout = Hb*wp (last 2 cols/row are junk)
    p_ref: (KH*KW*C, Lout)     f32   VMEM im2col scratch
    """
    C = x_ref.shape[2]
    lout = o_ref.shape[3]

    x = x_ref[0, 0]                                   # (C, Lin), single VMEM load
    # Fused im2col: each (dy, dx) tap is a CONTIGUOUS lane slice of the
    # flattened band, copied as a (C, Lout) block into the scratch.  The row
    # order (dy, dx) outer / channel inner matches the weight layout.
    for t in range(KH * KW):                          # statically unrolled, 9 copies
        dy, dx = divmod(t, KW)
        off = dy * wp + dx
        p_ref[t * C:(t + 1) * C, :] = x[:, off:off + lout].astype(p_ref.dtype)

    # One MXU matmul, channels-first: the long spatial dim is the moving dim,
    # the (COUT, Lout) result is lane-dense.
    acc = jnp.dot(w_ref[...], p_ref[...], preferred_element_type=jnp.float32)
    acc = acc + b_ref[...]                            # (COUT, 1) broadcast add
    o_ref[...] = jnp.maximum(acc, 0.0).astype(o_ref.dtype)[None, None]


@functools.partial(jax.jit, static_argnames=("band_rows", "out_dtype"))
def ocr_feature_extractor(images_nchw, weights, bias, *, band_rows=8,
                          out_dtype=jnp.float32):
    """images_nchw: (B, C, H, W) float32 in [0, 1] (PyTorch convention).
    weights: (KH*KW*C, COUT) f32, rows ordered (dy, dx) outer / channel inner.
    bias:    (1, COUT) f32.
    Returns features of shape (B, H, W, COUT) in `out_dtype`.
    """
    B, C, H, W = images_nchw.shape
    COUT = weights.shape[1]
    Hp, Wp = H + 2, W + 2
    Hb = band_rows if (H % band_rows == 0) else H     # rows of output per band
    n_bands = H // Hb
    K = KH * KW * C                                   # 27
    Lout = Hb * Wp                                    # flat output length per band
    Lin = -(-((Hb + 2) * Wp + 2) // 128) * 128        # band + halo + tap overrun

    # ToPILImage emulation (tensor.mul(255).byte() truncates) + zero 'SAME' pad
    # + flatten spatial + overlapping row bands + bf16 pack: one fused XLA prep
    # pass under jit (0..255 ints are exact in bf16).
    u8 = jnp.clip(jnp.floor(images_nchw * 255.0), 0.0, 255.0).astype(jnp.bfloat16)
    xp = jnp.pad(u8, ((0, 0), (0, 0), (1, 1), (1, 1)))          # (B, C, Hp, Wp)
    x_flat = xp.reshape(B, C, Hp * Wp)
    x_flat = jnp.pad(x_flat, ((0, 0), (0, 0), (0, Lin)))        # zero tail slack
    starts = (jnp.arange(n_bands, dtype=jnp.int32) * (Hb * Wp))[:, None]
    idx = starts + jnp.arange(Lin, dtype=jnp.int32)[None, :]    # (n_bands, Lin)
    x_bands = jnp.take(x_flat, idx, axis=2)                     # (B, C, nb, Lin)
    x_bands = jnp.transpose(x_bands, (0, 2, 1, 3))              # (B, nb, C, Lin)

    # Fold 1/255 into the tiny weight matrix, channels-first for the matmul.
    w_cf = jnp.transpose(weights * (1.0 / 255.0)).astype(jnp.bfloat16)  # (COUT, K)
    b_cf = bias.reshape(COUT, 1).astype(jnp.float32)

    flops = 2 * B * n_bands * Lout * K * COUT
    bytes_accessed = (x_bands.size * 2 + w_cf.size * 2 + b_cf.size * 4
                      + B * n_bands * COUT * Lout * jnp.dtype(out_dtype).itemsize)

    out_raw = pl.pallas_call(
        functools.partial(_ocr_conv_kernel, wp=Wp),
        out_shape=jax.ShapeDtypeStruct((B, n_bands, COUT, Lout), out_dtype),
        grid_spec=pltpu.PrefetchScalarGridSpec(
            num_scalar_prefetch=0,
            grid=(B, n_bands),
            in_specs=[
                pl.BlockSpec((1, 1, C, Lin), lambda b, r: (b, r, 0, 0)),
                pl.BlockSpec((COUT, K), lambda b, r: (0, 0)),
                pl.BlockSpec((COUT, 1), lambda b, r: (0, 0)),
            ],
            out_specs=pl.BlockSpec((1, 1, COUT, Lout), lambda b, r: (b, r, 0, 0)),
            scratch_shapes=[pltpu.VMEM((K, Lout), jnp.float32)],
        ),
        compiler_params=pltpu.CompilerParams(
            dimension_semantics=("parallel", "parallel")),
        cost_estimate=pl.CostEstimate(
            flops=flops, transcendentals=0, bytes_accessed=bytes_accessed),
    )(x_bands, w_cf, b_cf)

    # Wrapper-side layout plumbing back to NHWC; drop the 2 junk columns.
    out = out_raw.reshape(B, n_bands, COUT, Hb, Wp)
    out = jnp.transpose(out, (0, 1, 3, 4, 2))                   # (B, nb, Hb, Wp, COUT)
    out = out.reshape(B, H, Wp, COUT)[:, :, :W, :]
    return out


def _reference(images_nchw, weights, bias):
    """Pure-JAX reference of the same forward pass (for correctness check)."""
    B, C, H, W = images_nchw.shape
    COUT = weights.shape[1]
    u8 = jnp.clip(jnp.floor(images_nchw * 255.0), 0.0, 255.0)
    x = jnp.transpose(u8, (0, 2, 3, 1)).astype(jnp.float32)
    # Same folded, bf16-rounded weights the kernel uses: (img/255)@W == img@(W/255).
    w_s = (weights * (1.0 / 255.0)).astype(jnp.bfloat16).astype(jnp.float32)
    w_hwio = w_s.reshape(KH, KW, C, COUT)
    y = lax.conv_general_dilated(
        x, w_hwio, window_strides=(1, 1), padding="SAME",
        dimension_numbers=("NHWC", "HWIO", "NHWC"))
    return jnp.maximum(y + bias.reshape(1, 1, 1, COUT), 0.0)


if __name__ == "__main__":
    key = jax.random.PRNGKey(0)
    k_img, k_w, k_b = jax.random.split(key, 3)

    # Small shapes: batch=2, 3-channel (RGB) 16x16 images, 32 output features.
    B, C, H, W = 2, 3, 16, 16
    COUT = 32

    images = jax.random.uniform(k_img, (B, C, H, W), dtype=jnp.float32)

    # Deterministic synthetic "OCR" conv weights: (KH*KW*Cin, Cout) and bias.
    fan_in = KH * KW * C
    weights = (jax.random.normal(k_w, (fan_in, COUT), dtype=jnp.float32)
               * (1.0 / jnp.sqrt(fan_in)))
    bias = jax.random.normal(k_b, (1, COUT), dtype=jnp.float32) * 0.01

    ref = jax.block_until_ready(_reference(images, weights, bias))

    # f32 output (default): bit-consistent with the reference up to sum order.
    feats = jax.block_until_ready(ocr_feature_extractor(images, weights, bias))
    assert feats.shape == (B, H, W, COUT)
    assert feats.dtype == jnp.float32
    assert jnp.allclose(feats, ref, atol=1e-4, rtol=1e-4), "f32 mismatch vs reference"

    # bf16 output option: halves the dominant HBM stream; relaxed tolerance.
    feats_bf16 = jax.block_until_ready(
        ocr_feature_extractor(images, weights, bias, out_dtype=jnp.bfloat16))
    assert feats_bf16.shape == (B, H, W, COUT)
    assert feats_bf16.dtype == jnp.bfloat16
    assert jnp.allclose(feats_bf16.astype(jnp.float32), ref, atol=5e-2, rtol=5e-2), \
        "bf16 mismatch vs reference"

    print("KERNEL_OK")
</pallas_src>

<mosaic_0001>
module attributes {stable_mosaic.version = 11 : i64} {
  func.func @_ocr_conv_kernel(%arg0: i32, %arg1: i32, %arg2: memref<1x1x3x256xbf16, #tpu.memory_space<vmem>>, %arg3: memref<32x27xbf16, #tpu.memory_space<vmem>>, %arg4: memref<32x1xf32, #tpu.memory_space<vmem>>, %arg5: memref<1x1x32x144xf32, #tpu.memory_space<vmem>>, %arg6: memref<27x144xf32, #tpu.memory_space<vmem>>) attributes {dimension_semantics = [#tpu.dimension_semantics<parallel>, #tpu.dimension_semantics<parallel>], iteration_bounds = array<i64: 2, 2>, scalar_prefetch = 0 : i64, scratch_operands = 1 : i64, tpu.core_type = #tpu.core_type<tc>, window_params = [{transform_indices = @transform_0, window_bounds = array<i64: 1, 1, 3, 256>}, {pipeline_mode = #tpu.pipeline_mode<synchronous>, transform_indices = @transform_1, window_bounds = array<i64: 32, 27>}, {pipeline_mode = #tpu.pipeline_mode<synchronous>, transform_indices = @transform_2, window_bounds = array<i64: 32, 1>}, {transform_indices = @transform_3, window_bounds = array<i64: 1, 1, 32, 144>}]} {
    %c0 = arith.constant 0 : index
    %c0_0 = arith.constant 0 : index
    %c0_1 = arith.constant 0 : index
    %c0_2 = arith.constant 0 : index
    %0 = vector.load %arg2[%c0, %c0_0, %c0_1, %c0_2] : memref<1x1x3x256xbf16, #tpu.memory_space<vmem>>, vector<1x1x3x256xbf16>
    %1 = vector.shape_cast %0 : vector<1x1x3x256xbf16> to vector<3x256xbf16>
    %2 = vector.extract_strided_slice %1 {offsets = [0, 0], sizes = [3, 144], strides = [1, 1]} : vector<3x256xbf16> to vector<3x144xbf16>
    %3 = arith.extf %2 : vector<3x144xbf16> to vector<3x144xf32>
    %c0_3 = arith.constant 0 : index
    %c0_4 = arith.constant 0 : index
    %4 = vector.load %arg6[%c0_3, %c0_4] : memref<27x144xf32, #tpu.memory_space<vmem>>, vector<3x144xf32>
    tpu.vector_store %arg6[%c0_3, %c0_4], %3 {strides = array<i32>} : memref<27x144xf32, #tpu.memory_space<vmem>>, vector<3x144xf32>,
    %5 = vector.extract_strided_slice %1 {offsets = [0, 1], sizes = [3, 144], strides = [1, 1]} : vector<3x256xbf16> to vector<3x144xbf16>
    %6 = arith.extf %5 : vector<3x144xbf16> to vector<3x144xf32>
    %c3 = arith.constant 3 : index
    %c0_5 = arith.constant 0 : index
    %7 = vector.load %arg6[%c3, %c0_5] : memref<27x144xf32, #tpu.memory_space<vmem>>, vector<3x144xf32>
    tpu.vector_store %arg6[%c3, %c0_5], %6 {strides = array<i32>} : memref<27x144xf32, #tpu.memory_space<vmem>>, vector<3x144xf32>,
    %8 = vector.extract_strided_slice %1 {offsets = [0, 2], sizes = [3, 144], strides = [1, 1]} : vector<3x256xbf16> to vector<3x144xbf16>
    %9 = arith.extf %8 : vector<3x144xbf16> to vector<3x144xf32>
    %c6 = arith.constant 6 : index
    %c0_6 = arith.constant 0 : index
    %10 = vector.load %arg6[%c6, %c0_6] : memref<27x144xf32, #tpu.memory_space<vmem>>, vector<3x144xf32>
    tpu.vector_store %arg6[%c6, %c0_6], %9 {strides = array<i32>} : memref<27x144xf32, #tpu.memory_space<vmem>>, vector<3x144xf32>,
    %11 = vector.extract_strided_slice %1 {offsets = [0, 18], sizes = [3, 144], strides = [1, 1]} : vector<3x256xbf16> to vector<3x144xbf16>
    %12 = arith.extf %11 : vector<3x144xbf16> to vector<3x144xf32>
    %c9 = arith.constant 9 : index
    %c0_7 = arith.constant 0 : index
    %13 = vector.load %arg6[%c9, %c0_7] : memref<27x144xf32, #tpu.memory_space<vmem>>, vector<3x144xf32>
    tpu.vector_store %arg6[%c9, %c0_7], %12 {strides = array<i32>} : memref<27x144xf32, #tpu.memory_space<vmem>>, vector<3x144xf32>,
    %14 = vector.extract_strided_slice %1 {offsets = [0, 19], sizes = [3, 144], strides = [1, 1]} : vector<3x256xbf16> to vector<3x144xbf16>
    %15 = arith.extf %14 : vector<3x144xbf16> to vector<3x144xf32>
    %c12 = arith.constant 12 : index
    %c0_8 = arith.constant 0 : index
    %16 = vector.load %arg6[%c12, %c0_8] : memref<27x144xf32, #tpu.memory_space<vmem>>, vector<3x144xf32>
    tpu.vector_store %arg6[%c12, %c0_8], %15 {strides = array<i32>} : memref<27x144xf32, #tpu.memory_space<vmem>>, vector<3x144xf32>,
    %17 = vector.extract_strided_slice %1 {offsets = [0, 20], sizes = [3, 144], strides = [1, 1]} : vector<3x256xbf16> to vector<3x144xbf16>
    %18 = arith.extf %17 : vector<3x144xbf16> to vector<3x144xf32>
    %c15 = arith.constant 15 : index
    %c0_9 = arith.constant 0 : index
    %19 = vector.load %arg6[%c15, %c0_9] : memref<27x144xf32, #tpu.memory_space<vmem>>, vector<3x144xf32>
    tpu.vector_store %arg6[%c15, %c0_9], %18 {strides = array<i32>} : memref<27x144xf32, #tpu.memory_space<vmem>>, vector<3x144xf32>,
    %20 = vector.extract_strided_slice %1 {offsets = [0, 36], sizes = [3, 144], strides = [1, 1]} : vector<3x256xbf16> to vector<3x144xbf16>
    %21 = arith.extf %20 : vector<3x144xbf16> to vector<3x144xf32>
    %c18 = arith.constant 18 : index
    %c0_10 = arith.constant 0 : index
    %22 = vector.load %arg6[%c18, %c0_10] : memref<27x144xf32, #tpu.memory_space<vmem>>, vector<3x144xf32>
    tpu.vector_store %arg6[%c18, %c0_10], %21 {strides = array<i32>} : memref<27x144xf32, #tpu.memory_space<vmem>>, vector<3x144xf32>,
    %23 = vector.extract_strided_slice %1 {offsets = [0, 37], sizes = [3, 144], strides = [1, 1]} : vector<3x256xbf16> to vector<3x144xbf16>
    %24 = arith.extf %23 : vector<3x144xbf16> to vector<3x144xf32>
    %c21 = arith.constant 21 : index
    %c0_11 = arith.constant 0 : index
    %25 = vector.load %arg6[%c21, %c0_11] : memref<27x144xf32, #tpu.memory_space<vmem>>, vector<3x144xf32>
    tpu.vector_store %arg6[%c21, %c0_11], %24 {strides = array<i32>} : memref<27x144xf32, #tpu.memory_space<vmem>>, vector<3x144xf32>,
    %26 = vector.extract_strided_slice %1 {offsets = [0, 38], sizes = [3, 144], strides = [1, 1]} : vector<3x256xbf16> to vector<3x144xbf16>
    %27 = arith.extf %26 : vector<3x144xbf16> to vector<3x144xf32>
    %c24 = arith.constant 24 : index
    %c0_12 = arith.constant 0 : index
    %28 = vector.load %arg6[%c24, %c0_12] : memref<27x144xf32, #tpu.memory_space<vmem>>, vector<3x144xf32>
    tpu.vector_store %arg6[%c24, %c0_12], %27 {strides = array<i32>} : memref<27x144xf32, #tpu.memory_space<vmem>>, vector<3x144xf32>,
    %c0_13 = arith.constant 0 : index
    %c0_14 = arith.constant 0 : index
    %29 = vector.load %arg3[%c0_13, %c0_14] : memref<32x27xbf16, #tpu.memory_space<vmem>>, vector<32x27xbf16>
    %c0_15 = arith.constant 0 : index
    %c0_16 = arith.constant 0 : index
    %30 = vector.load %arg6[%c0_15, %c0_16] : memref<27x144xf32, #tpu.memory_space<vmem>>, vector<27x144xf32>
    %cst = arith.constant dense<0.000000e+00> : vector<32x144xf32>
    %31 = tpu.matmul %29, %30, %cst {dimension_numbers = #tpu.dot_dimension_numbers<[1], [0], [0], [1], [0, 0, 1, 1], [], []>} : vector<32x27xbf16>, vector<27x144xf32>, vector<32x144xf32> -> vector<32x144xf32>
    %c0_17 = arith.constant 0 : index
    %c0_18 = arith.constant 0 : index
    %32 = vector.load %arg4[%c0_17, %c0_18] : memref<32x1xf32, #tpu.memory_space<vmem>>, vector<32x1xf32>
    %33 = vector.broadcast %32 : vector<32x1xf32> to vector<32x144xf32>
    %34 = arith.addf %31, %33 : vector<32x144xf32>
    %cst_19 = arith.constant 0.000000e+00 : f32
    %35 = vector.broadcast %cst_19 : f32 to vector<32x144xf32>
    %36 = arith.maximumf %34, %35 : vector<32x144xf32>
    %37 = vector.shape_cast %36 : vector<32x144xf32> to vector<1x1x32x144xf32>
    %c0_20 = arith.constant 0 : index
    %c0_21 = arith.constant 0 : index
    %c0_22 = arith.constant 0 : index
    %c0_23 = arith.constant 0 : index
    %38 = vector.load %arg5[%c0_20, %c0_21, %c0_22, %c0_23] : memref<1x1x32x144xf32, #tpu.memory_space<vmem>>, vector<1x1x32x144xf32>
    tpu.vector_store %arg5[%c0_20, %c0_21, %c0_22, %c0_23], %37 {strides = array<i32>} : memref<1x1x32x144xf32, #tpu.memory_space<vmem>>, vector<1x1x32x144xf32>,
    return
  }
  func.func @transform_0(%arg0: i32, %arg1: i32) -> (i32, i32, i32, i32) {
    %c0_i32 = arith.constant 0 : i32
    %c0_i32_0 = arith.constant 0 : i32
    %c0_i32_1 = arith.constant 0 : i32
    return %arg0, %arg1, %c0_i32, %c0_i32_0 : i32, i32, i32, i32
  }
  func.func @transform_1(%arg0: i32, %arg1: i32) -> (i32, i32) {
    %c0_i32 = arith.constant 0 : i32
    %c0_i32_0 = arith.constant 0 : i32
    %c0_i32_1 = arith.constant 0 : i32
    return %c0_i32, %c0_i32_0 : i32, i32
  }
  func.func @transform_2(%arg0: i32, %arg1: i32) -> (i32, i32) {
    %c0_i32 = arith.constant 0 : i32
    %c0_i32_0 = arith.constant 0 : i32
    %c0_i32_1 = arith.constant 0 : i32
    return %c0_i32, %c0_i32_0 : i32, i32
  }
  func.func @transform_3(%arg0: i32, %arg1: i32) -> (i32, i32, i32, i32) {
    %c0_i32 = arith.constant 0 : i32
    %c0_i32_0 = arith.constant 0 : i32
    %c0_i32_1 = arith.constant 0 : i32
    return %arg0, %arg1, %c0_i32, %c0_i32_0 : i32, i32, i32, i32
  }
}

</mosaic_0001>

<bundles_post_ra>
// kernel: ocr_feature_extractor.1
= control target key start
LH: loop header
LB: loop body
LE: loop exit
PB: predicated region body
PF: predicated region fallthrough
CT: control target
= control target key end

     0   :  { %s776_s12 = smov 0   ;;  %s778_s13 = smov 0   ;;  %s862_s0 = inlined_call_operand.vmem [shape: bf16[2,2,3,256], index: 0, kind: input, shape index: {}]   ;;  %s863_s1 = inlined_call_operand.vmem [shape: bf16[32,27], index: 1, kind: input, shape index: {}]   ;;  %s864_s2 = inlined_call_operand.vmem [shape: f32[32,1], index: 2, kind: input, shape index: {}]   ;;  %s865_s3 = inlined_call_operand.vmem [shape: f32[2,2,32,144], index: 3, kind: output, shape index: {}]  }
   0x1   :  { %s780_s14 = smov 0   ;;  %s782_s15 = smov 0  }
   0x2   :  { %s784_s16 = smov 0  }
   0x3 LB: > { %s22_s17 = sadd.s32 1, %s736_s14  ;;  %s25_s18 = sadd.s32 1, %s740_s15  ;;  %s744_s16 = sphi %s784_s16, %s13_s16   ;;  %s740_s15 = sphi %s782_s15, %s869_s15   ;;  %s736_s14 = sphi %s780_s14, %s868_s14   ;;  %s732_s13 = sphi %s778_s13, %s867_s13   ;;  %s728_s12 = sphi %s776_s12, %s866_s12  }
   0x4   : > { %p23_p0 = scmp.ge.s32.totalorder %s22_s17, 2  ;;  %p583_p1 = scmp.ge.s32.totalorder %s744_s16, 1 }
   0x5   : > { %p157_p2 = scmp.lt.s32.totalorder %s744_s16, 5 }
   0x6   : > { %s871_s17 = smov (%p23_p0, %s22_s17), 0  ;;  %s873_s18 = smov (!%p23_p0, %s25_s18), %s740_s15 }
   0x7   : > { %p158_p3 = pnand %p583_p1, %p157_p2  ;;  %p27_p4 = scmp.ge.s32.totalorder %s873_s18, 2 }
   0x8   : > { %p189_p5 = scmp.lt.s32.totalorder (!%p158_p3), %s732_s13, 1  ;;  %p191_p6 = scmp.lt.s32.totalorder (!%p158_p3), %s728_s12, 1  ;;  %vm214_vm0 = vcmask (!%p158_p3), 124928   ;;  %v754_v24 = vmov (!%p158_p3), 0   ;;  %v335_v25 = vld [vmem:[%s864_s2 + $0x8] sm:$0xff] (!%p158_p3)  ;;  %v334_v26 = vld [vmem:[%s864_s2] sm:$0xff] (!%p158_p3) }
   0x9   : > { %s875_s18 = smov (%p27_p4, %s873_s18), 0  ;;  %161 = sbr.rel (%p158_p3) target bundleno = 393 (0x189), region = 32 }
   0xa   : > { %s746_s26 = smov (!%p158_p3), 109   ;;  %s747_s27 = smov (!%p158_p3), 127   ;;  %446 = vmatprep.mubr.bf16.mxu0 (!%p158_p3), %v754_v24  ;;  %456 = vmatprep.mubr.bf16.mxu1 (!%p158_p3), %v754_v24  ;;  %v336_v27 = vld [vmem:[%s864_s2 + $0x10] sm:$0xff] (!%p158_p3)  ;;  %v337_v28 = vld [vmem:[%s864_s2 + $0x18] sm:$0xff] (!%p158_p3)  ;;  %vm263_vm1 = vcmask (!%p158_p3), 891904   ;;  %vm268_vm2 = vcmask (!%p158_p3), 129028  }
   0xb   : > { %s748_s28 = smov (!%p158_p3), 110   ;;  %s749_s29 = smov (!%p158_p3), 126   ;;  %703 = vset.pattern.permute.xlu1 (!%p158_p3), %v754_v24  ;;  %702 = vset.pattern.permute.xlu0 (!%p158_p3), %v754_v24  ;;  %vm222_vm3 = vcmask (!%p158_p3), 1039360   ;;  %vm227_vm4 = vcmask (!%p158_p3), 128003   ;;  %vm251_vm5 = vcmask (!%p158_p3), 900096   ;;  %vm256_vm6 = vcmask (!%p158_p3), 125953  }
   0xc   : > { %s750_s30 = smov (!%p158_p3), 92   ;;  %s751_s4 = smov (!%p158_p3), 108   ;;  %vm235_vm7 = vcmask (!%p158_p3), 1031168   ;;  %vm240_vm8 = vcmask (!%p158_p3), 130054   ;;  %vm243_vm9 = vcmask (!%p158_p3), 122880   ;;  %vm292_vm10 = vcmask (!%p158_p3), 752640  }
   0xd   : > { %s752_s5 = smov (!%p158_p3), 90   ;;  %s753_s6 = smov (!%p158_p3), 91   ;;  %vm297_vm11 = vcmask (!%p158_p3), 126978   ;;  %vm276_vm12 = vcmask (!%p158_p3), 883712   ;;  %vm281_vm13 = vcmask (!%p158_p3), 130055   ;;  %vm284_vm14 = vcmask (!%p158_p3), 123904  }
   0xe   : > { %vm316_vm15 = vcmask (!%p158_p3), 736256  }
  0x10   : > { %s877_s13 = smov (!%p189_p5, %s732_s13), 1  ;;  %s879_s12 = smov (!%p191_p6, %s728_s12), 1 }
  0x11   : > { %s585_s19 = sshll.u32 %s877_s13, 2  ;;  %s584_s20 = sshll.u32 %s879_s12, 1 }
  0x12   : > { %s195_s21 = sadd.s32 %s585_s19, %s584_s20  ;;  %s588_s23 = sshll.u32 %s877_s13, 4 }
  0x13   : > { %s586_s22 = sshll.u32 %s195_s21, 1 }
  0x14   : > { %s197_s25 = scalar_lea.vmem %s862_s0, %s586_s22  ;;  %s587_s22 = sshll.u32 %s879_s12, 3 }
  0x15   : > { %v208_v0 = vld [vmem:[%s197_s25] sm:$0xf]  ;;  %s830_s24 = sadd.s32 %s588_s23, %s587_s22 }
  0x16   : > { %v209_v1 = vunpack.c.l.bf16 %v208_v0 }
  0x18   : > { %v258_v2 = vcombine.low %v209_v1, %v209_v1  ;;  %213 = vst [vmem:[#allocation2] sm:$0x7] %v209_v1  ;;  %v211_v3 = vcombine.high %v209_v1, %v209_v1  ;;  %v216_v4 = vrot.slane %v209_v1, 5  ;;  %v245_v5 = vrot.slane %v209_v1, 7 }
  0x19   : > { %v229_v6 = vrot.slane %v209_v1, 2  ;;  %v286_v13 = vrot.slane %v209_v1, 6  ;;  %v270_v16 = vrot.slane %v209_v1, 1  ;;  %v299_v20 = vrot.slane %v209_v1, 3 }
  0x1a   : > { %v662_v7 = vpack.i.bf16 %v209_v1, %v258_v2  ;;  %v217_v8 = vrot.slane %v211_v3, 5  ;;  %v246_v9 = vrot.slane %v211_v3, 7  ;;  %v230_v10 = vrot.slane %v211_v3, 2  ;;  %215 = vst.msk [vmem:[#allocation2 + $0x8] sm:$0x7] %vm214_vm0, %v211_v3 }
  0x1b   : > { %v287_v14 = vrot.slane %v211_v3, 6  ;;  %v271_v17 = vrot.slane %v211_v3, 1  ;;  %v300_v21 = vrot.slane %v211_v3, 3  ;;  %v697_v22 = vpack.i.bf16 %v211_v3, %v209_v1 }
  0x1c   : > { %663 = vrot.lane.b32.xlu1 %v662_v7, %s746_s26  ;;  %v667_v11 = vpack.i.bf16 %v217_v8, %v216_v4  ;;  %v677_v12 = vpack.i.bf16 %v246_v9, %v245_v5  ;;  %v672_v15 = vpack.i.bf16 %v230_v10, %v229_v6  ;;  %v704_v9 = vld [vmem:[%s863_s1] sm:$0xff]   ;;  %v705_v10 = vld [vmem:[%s863_s1 + $0x8] sm:$0xff]  }
  0x1d   : > { %v687_v18 = vpack.i.bf16 %v287_v14, %v286_v13  ;;  %v682_v19 = vpack.i.bf16 %v271_v17, %v270_v16  ;;  %v692_v23 = vpack.i.bf16 %v300_v21, %v299_v20 }
  0x1e   : > { %668 = vrot.lane.b32.xlu0 %v667_v11, %s747_s27  ;;  %s589_s27 = sshll.u32 %s830_s24, 3 }
  0x20   : > { %678 = vrot.lane.b32.xlu1 %v677_v12, %s748_s28 }
  0x22   : > { %673 = vrot.lane.b32.xlu0 %v672_v15, %s749_s29 }
  0x24   : > { %688 = vrot.lane.b32.xlu1 %v687_v18, %s750_s30  ;;  %s206_s30 = scalar_lea.vmem %s865_s3, %s589_s27 }
  0x26   : > { %683 = vrot.lane.b32.xlu0 %v682_v19, %s751_s4 }
  0x28   : > { %698 = vrot.lane.b32.xlu1 %v697_v22, %s752_s5 }
  0x2a   : > { %693 = vrot.lane.b32.xlu0 %v692_v23, %s753_s6 }
  0x2c   : > { %345 = vperm.xlu1 %703, %v335_v25  }
  0x2e   : > { %340 = vperm.xlu0 %702, %v334_v26  }
  0x30   : > { %350 = vperm.xlu1 %703, %v336_v27  }
  0x32   : > { %355 = vperm.xlu0 %702, %v337_v28  }
  0x8e   : > { %v664_v29 = vpop.permute.xlu1 %663 }
  0x8f   : > { %v666_v30 = vunpack.i.h.bf16 %v664_v29  ;;  %v665_v31 = vunpack.i.l.bf16 %v664_v29 }
  0x90   : > { %v669_v32 = vpop.permute.xlu0 %668 }
  0x91   : > { %269 = vst.msk [vmem:[#allocation2 + $0x18] sm:$0x70] %vm268_vm2, %v666_v30  ;;  %v264_v33 = vsel %vm263_vm1, %v665_v31, %v666_v30  ;;  %v671_v34 = vunpack.i.h.bf16 %v669_v32  ;;  %v670_v35 = vunpack.i.l.bf16 %v669_v32  ;;  %vm305_vm1 = vcmask 744448  }
  0x92   : > { %267 = vst [vmem:[#allocation2 + $0x10] sm:$0x70] %v264_v33  ;;  %v679_v36 = vpop.permute.xlu1 %678  ;;  %vm310_vm2 = vcmask 130053  }
  0x93   : > { %228 = vst.msk [vmem:[#allocation2 + $0x8] sm:$0x38] %vm227_vm4, %v671_v34  ;;  %v223_v37 = vsel %vm222_vm3, %v670_v35, %v671_v34  ;;  %v681_v38 = vunpack.i.h.bf16 %v679_v36  ;;  %v680_v39 = vunpack.i.l.bf16 %v679_v36  ;;  %vm375_vm3 = vcmask 1042432  }
  0x94   : > { %226 = vst [vmem:[#allocation2] sm:$0x38] %v223_v37  ;;  %v674_v40 = vpop.permute.xlu0 %673 }
  0x95   : > { %257 = vst.msk [vmem:[#allocation2 + $0x18] sm:$0xe] %vm256_vm6, %v681_v38  ;;  %v252_v41 = vsel %vm251_vm5, %v680_v39, %v681_v38  ;;  %v676_v42 = vunpack.i.h.bf16 %v674_v40  ;;  %v675_v43 = vunpack.i.l.bf16 %v674_v40  ;;  %vm368_vm5 = vcmask 220160  }
  0x96   : > { %255 = vst [vmem:[#allocation2 + $0x10] sm:$0xe] %v252_v41  ;;  %v689_v44 = vpop.permute.xlu1 %688  ;;  %vm476_vm6 = vcmask 130048  }
  0x97   : > { %241 = vst.msk [vmem:[#allocation2 + $0x8] sm:$0xc0] %vm240_vm8, %v676_v42  ;;  %v236_v45 = vsel %vm235_vm7, %v675_v43, %v676_v42  ;;  %v691_v46 = vunpack.i.h.bf16 %v689_v44  ;;  %v690_v47 = vunpack.i.l.bf16 %v689_v44 }
  0x98   : > { %244 = vst.msk [vmem:[#allocation2 + $0x18] sm:$0x1] %vm243_vm9, %v676_v42  ;;  %239 = vst [vmem:[#allocation2 + $0x10] ss:$-12 sps:$4 sm:$0xc1] %v236_v45   ;;  %v684_v48 = vpop.permute.xlu0 %683 }
  0x99   : > { %298 = vst.msk [vmem:[#allocation2 + $0x28] sm:$0x1c] %vm297_vm11, %v691_v46  ;;  %v293_v49 = vsel %vm292_vm10, %v690_v47, %v691_v46  ;;  %v686_v50 = vunpack.i.h.bf16 %v684_v48  ;;  %v685_v51 = vunpack.i.l.bf16 %v684_v48 }
  0x9a   : > { %296 = vst [vmem:[#allocation2 + $0x20] sm:$0x1c] %v293_v49  ;;  %v699_v52 = vpop.permute.xlu1 %698 }
  0x9b   : > { %282 = vst.msk [vmem:[#allocation2 + $0x18] sm:$0x80] %vm281_vm13, %v686_v50  ;;  %v277_v53 = vsel %vm276_vm12, %v685_v51, %v686_v50  ;;  %v701_v54 = vunpack.i.h.bf16 %v699_v52  ;;  %v700_v55 = vunpack.i.l.bf16 %v699_v52 }
  0x9c   : > { %285 = vst.msk [vmem:[#allocation2 + $0x28] sm:$0x3] %vm284_vm14, %v686_v50  ;;  %280 = vst [vmem:[#allocation2 + $0x20] ss:$-12 sps:$4 sm:$0x83] %v277_v53   ;;  %v694_v56 = vpop.permute.xlu0 %693 }
  0x9d   : > { %321 = vst.msk [vmem:[#allocation2 + $0x38] sm:$0x7] %vm214_vm0, %v701_v54  ;;  %v317_v57 = vsel %vm316_vm15, %v700_v55, %v701_v54  ;;  %v696_v58 = vunpack.i.h.bf16 %v694_v56  ;;  %v695_v59 = vunpack.i.l.bf16 %v694_v56  ;;  %vm755_vm0 = vmmov 1  }
  0x9e   : > { %320 = vst [vmem:[#allocation2 + $0x30] sm:$0x7] %v317_v57  ;;  %v327_v61 = vld [vmem:[#allocation2 + $0x8] sm:$0xff]  ;;  %vm603_vm4 = vmpackc.low %vm375_vm3, %vm755_vm0 }
  0x9f   : > { %311 = vst.msk [vmem:[#allocation2 + $0x28] sm:$0xe0] %vm310_vm2, %v696_v58  ;;  %v306_v60 = vsel %vm305_vm1, %v695_v59, %v696_v58  ;;  %v326_v0 = vld [vmem:[#allocation2] sm:$0xff] }
  0xa0   : > { %309 = vst [vmem:[#allocation2 + $0x20] sm:$0xe0] %v306_v60 }
  0xa2   : > { %v329_v62 = vld [vmem:[#allocation2 + $0x18] sm:$0xff] }
  0xa3   : > { %v598_v63 = vpack.c.bf16 %v329_v62, %v327_v61  ;;  %v328_v1 = vld [vmem:[#allocation2 + $0x10] sm:$0xff] }
  0xa4   : > { %v600_v2 = vpack.c.bf16 %v328_v1, %v326_v0  ;;  %v333_v3 = vld [vmem:[#allocation2 + $0x38] sm:$0x7] }
  0xa5   : > { %599 = vmatprep.subr.bf16.mxu0 %v598_v63  ;;  %608 = vmatprep.subr.bf16.mxu1 %v598_v63  ;;  %v332_v4 = vld [vmem:[#allocation2 + $0x30] sm:$0x7] }
  0xa6   : > { %601 = vmatpush1.bf16.msra.mxu0 %v600_v2  ;;  %610 = vmatpush1.bf16.msra.mxu1 %v600_v2  ;;  %v331_v5 = vld [vmem:[#allocation2 + $0x28] sm:$0xff] }
  0xa7   : > { %v602_v6 = vpack.c.bf16 %v333_v3, %v331_v5  ;;  %v330_v7 = vld [vmem:[#allocation2 + $0x20] sm:$0xff] }
  0xa8   : > { %v605_v8 = vpack.c.bf16 %v332_v4, %v330_v7 }
  0xa9   : > { %604 = vmatprep.subr.msk.bf16.mxu0 %vm603_vm4, %v602_v6  ;;  %609 = vmatprep.subr.msk.bf16.mxu1 %vm603_vm4, %v602_v6 }
  0xaa   : > { %607 = vmatpush1.bf16.msk.msra.mxu0 %vm603_vm4, %v605_v8  ;;  %611 = vmatpush1.bf16.msk.msra.mxu1 %vm603_vm4, %v605_v8 }
  0xab   : > { %v346_v11 = vpop.permute.xlu1 %345 }
  0xad   : > { %594 = vmatmul.mubr.msk.bf16.vlgmr.msra.gmra.mrb[0].mxu0 %vm368_vm5, %v704_v9  ;;  %595 = vmatmul.mubr.msk.bf16.vlgmr.msra.gmra.mrb[0].mxu1 %vm368_vm5, %v705_v10  ;;  %v341_v12 = vpop.permute.xlu0 %340 }
  0xaf   : > { %v351_v13 = vpop.permute.xlu1 %350 }
  0xb1   : > { %v356_v14 = vpop.permute.xlu0 %355 }
 0x180   : > { %v448_v15 = vpop.f32.mrb[0].mxu0  ;;  %v458_v16 = vpop.f32.mrb[0].mxu1 }
 0x181   : > { %v449_v17 = vadd.f32 %v448_v15, %v341_v12  ;;  %v459_v18 = vadd.f32 %v458_v16, %v351_v13  ;;  %v450_v19 = vpop.f32.mrb[1].mxu0  ;;  %v460_v20 = vpop.f32.mrb[1].mxu1 }
 0x182   : > { %v451_v21 = vadd.f32 %v450_v19, %v341_v12  ;;  %v461_v22 = vadd.f32 %v460_v20, %v351_v13  ;;  %v452_v23 = vpop.f32.mrb[2].mxu0  ;;  %v462_v24 = vpop.f32.mrb[2].mxu1 }
 0x183   : > { %v467_v25 = vmax.f32 %v449_v17, 0.0  ;;  %v471_v26 = vmax.f32 %v459_v18, 0.0  ;;  %v453_v27 = vadd.f32 %v452_v23, %v346_v11  ;;  %v463_v28 = vadd.f32 %v462_v24, %v356_v14  ;;  %v454_v29 = vpop.f32.mrb[3].mxu0  ;;  %v464_v30 = vpop.f32.mrb[3].mxu1 }
 0x184   : > { %v468_v31 = vmax.f32 %v451_v21, 0.0  ;;  %v472_v32 = vmax.f32 %v461_v22, 0.0  ;;  %v455_v33 = vadd.f32 %v454_v29, %v346_v11  ;;  %v465_v34 = vadd.f32 %v464_v30, %v356_v14 }
 0x185   : > { %475 = vst [vmem:[%s206_s30] sm:$0xff] %v467_v25  ;;  %480 = vst [vmem:[%s206_s30 + $0x20] sm:$0xff] %v471_v26  ;;  %v469_v35 = vmax.f32 %v453_v27, 0.0  ;;  %v473_v36 = vmax.f32 %v463_v28, 0.0 }
 0x186   : > { %477 = vst.msk [vmem:[%s206_s30 + $0x8] sm:$0xff] %vm476_vm6, %v468_v31  ;;  %481 = vst.msk [vmem:[%s206_s30 + $0x28] sm:$0xff] %vm476_vm6, %v472_v32  ;;  %v470_v37 = vmax.f32 %v455_v33, 0.0  ;;  %v474_v38 = vmax.f32 %v465_v34, 0.0 }
 0x187   : > { %478 = vst [vmem:[%s206_s30 + $0x10] sm:$0xff] %v469_v35  ;;  %482 = vst [vmem:[%s206_s30 + $0x30] sm:$0xff] %v473_v36 }
 0x188   : > { %479 = vst.msk [vmem:[%s206_s30 + $0x18] sm:$0xff] %vm476_vm6, %v470_v37  ;;  %483 = vst.msk [vmem:[%s206_s30 + $0x38] sm:$0xff] %vm476_vm6, %v474_v38 }
 0x189 PF: > { %s13_s16 = sadd.s32 1, %s744_s16   ;;  %s866_s12 = smov %s736_s14 }
 0x18a   : > { %p10_p7 = scmp.ge.s32.totalorder %s13_s16, 6   ;;  %s867_s13 = smov %s740_s15 }
 0x18b   : > { %s868_s14 = smov %s871_s17  ;;  %s869_s15 = smov %s875_s18 }
 0x18c   :  { %12 = sbr.rel (!%p10_p7) target bundleno = 3 (0x3), region = 62 }

</bundles_post_ra>
